<compile_context>
chip_gen: v6e
topology: v6e:2x2x1
jax: 0.10.0
libtpu: 0.0.40
codegen_flags: <defaults>
</compile_context>

<pallas_src>
import functools

import jax
import jax.numpy as jnp
from jax import lax
from jax.experimental import pallas as pl
from jax.experimental.pallas import tpu as pltpu

EMB_DIM = 64
LN_EPS = 1e-5


def _round_up(x, m):
    return ((x + m - 1) // m) * m


# ---------------------------------------------------------------------------
# Kernel
# ---------------------------------------------------------------------------
def _cross_attention_kernel(q_ref, k_ref, v_ref, w_ref, vec_ref, o_ref, *,
                            scale, mxu_dtype):
    TB, Sq, E = q_ref.shape
    _, Sk, _ = k_ref.shape
    mq = TB * Sq
    mk = TB * Sk

    # Upcast to f32 BEFORE flattening so the (TB,S,E)->(TB*S,E) reshape is
    # layout-free regardless of the input dtype (a bf16 reshape with S=8
    # would otherwise be a relayout copy).
    q2 = q_ref[...].astype(jnp.float32).reshape(mq, E)
    k2 = k_ref[...].astype(jnp.float32).reshape(mk, E)
    v2 = v_ref[...].astype(jnp.float32).reshape(mk, E)

    # ---- Fused Q/K/V projection -------------------------------------------
    # Stack the three streams on the row axis and multiply once by the packed
    # [Wq | Wk | Wv | 0-pad] weight: a single (mq+2*mk, E) x (E, n_proj)
    # matmul — one MXU weight load, lane-dense (>=256-wide) results — instead
    # of three N=64, quarter-width matmuls.
    x_all = jnp.concatenate([q2, k2, v2], axis=0).astype(mxu_dtype)
    w_all = w_ref[...].astype(mxu_dtype)
    proj = jnp.dot(x_all, w_all, preferred_element_type=jnp.float32)

    bq = vec_ref[0:1, :].astype(jnp.float32)
    bk = vec_ref[1:2, :].astype(jnp.float32)
    bv = vec_ref[2:3, :].astype(jnp.float32)
    gamma = vec_ref[3:4, :].astype(jnp.float32)
    beta = vec_ref[4:5, :].astype(jnp.float32)

    # Static slices: q rows take the Wq columns, k rows the Wk columns, etc.
    q3 = (proj[:mq, 0:E] + bq).reshape(TB, Sq, E)
    k3 = (proj[mq:mq + mk, E:2 * E] + bk).reshape(TB, Sk, E)
    v3 = (proj[mq + mk:mq + 2 * mk, 2 * E:3 * E] + bv).reshape(TB, Sk, E)

    # ---- Scaled dot-product attention --------------------------------------
    # Contract on the shared last dim (no explicit K transpose / XLU pass).
    # TODO(synk): for tiny Sk (<128) the scores vregs are lane-sparse; packing
    # several batch elements into the lane dim would raise occupancy but only
    # pays off at much larger problem sizes.
    scores = jnp.einsum("bqe,bke->bqk",
                        q3.astype(mxu_dtype), k3.astype(mxu_dtype),
                        preferred_element_type=jnp.float32) * scale

    # Numerically stable softmax, all f32 (v5e has no bf16 VPU/EUP).
    m = jnp.max(scores, axis=-1, keepdims=True)
    e = jnp.exp(scores - m)
    denom = jnp.sum(e, axis=-1, keepdims=True)
    # Exact reciprocal: keeps parity with the PyTorch softmax; EUP/VPU are
    # nowhere near the bottleneck here.
    weights = e * pl.reciprocal(denom)

    attended = jnp.einsum("bqk,bke->bqe",
                          weights.astype(mxu_dtype), v3.astype(mxu_dtype),
                          preferred_element_type=jnp.float32)

    # ---- LayerNorm over the embedding dim (biased variance, torch-style) ---
    att2 = attended.reshape(mq, E)
    mean = jnp.mean(att2, axis=-1, keepdims=True)
    centered = att2 - mean
    var = jnp.mean(centered * centered, axis=-1, keepdims=True)
    normed = centered * lax.rsqrt(var + LN_EPS)
    out2 = normed * gamma + beta

    # TODO(synk): E=64 output blocks store with 64-lane masked vst; padding E
    # to 128 end-to-end (lane-dense stores) only pays once B*Sq is large.
    o_ref[...] = out2.reshape(TB, Sq, E).astype(o_ref.dtype)


# ---------------------------------------------------------------------------
# Tiling / generation heuristics
# ---------------------------------------------------------------------------
def _device_info():
    """(two_tensorcores, vmem_tile_budget_bytes, scoped_vmem_default_bytes)."""
    try:
        kind = jax.devices()[0].device_kind.lower()
    except Exception:  # pragma: no cover - conservative defaults
        kind = ""
    is_v7 = "v7" in kind
    is_v5e = ("v5e" in kind) or ("v5 lite" in kind) or ("v5litepod" in kind)
    two_cores = is_v7                                   # v7x: 2 TCs per chip
    vmem_budget = (48 << 20) if is_v7 else (100 << 20)  # 64 MiB vs 128 MiB phys
    scoped_default = (16 << 20) if is_v5e else (32 << 20)
    return two_cores, vmem_budget, scoped_default


def _choose_batch_tile(B, Sq, Sk, E, itemsize, *, two_cores, vmem_budget,
                       target_rows=512):
    """Pick the batch tile TB (generation-aware, VMEM-capped, divisor-first)."""
    # MXU-fill target: TB*Sq rows >= ~512 (no forced 2-step grid — on a
    # single TensorCore the grid is a serial loop and extra steps are pure
    # ~0.35 us/step overhead).
    cap = min(B, max(1, -(-target_rows // max(Sq, 1))))

    # VMEM cap per batch element: double-buffered i/o blocks + f32 working set.
    n_proj = _round_up(3 * E, 128)
    per_b = 2 * (2 * Sq + 2 * Sk) * E * itemsize        # q/k/v/out blocks, x2 buffers
    per_b += (Sq + 2 * Sk) * (E + n_proj) * 4           # stacked input + fused proj (f32)
    per_b += (4 * Sq + 4 * Sk) * E * 4 + 2 * Sq * Sk * 4  # misc temporaries
    cap = min(cap, max(1, int(vmem_budget // max(per_b, 1))))

    # v7x only: split into two parallel grid steps, but only if each half
    # still has >=256 MXU rows; otherwise a single big step is cheaper.
    if two_cores and cap >= B and B >= 2 and (B // 2) * Sq >= 256:
        cap = -(-B // 2)

    # Prefer a TB that divides B (avoids the wrapper-side jnp.pad copy of all
    # three inputs); fall back to the cap (+pad) only if the best divisor
    # would more than double the step count.
    tb_div = 1
    for t in range(min(B, cap), 0, -1):
        if B % t == 0:
            tb_div = t
            break
    return tb_div if tb_div * 2 >= cap else cap


def _estimate_vmem_bytes(TB, Sq, Sk, E, n_proj, in_item, out_item, par_item):
    blocks = 2 * TB * (Sq + 2 * Sk) * E * in_item        # q/k/v, double-buffered
    blocks += 2 * TB * Sq * E * out_item                 # output, double-buffered
    params = 2 * (E * n_proj + 8 * E) * par_item
    work = TB * (Sq + 2 * Sk) * (E + n_proj) * 4
    work += TB * (3 * Sq + 2 * Sk) * E * 4 + 2 * TB * Sq * Sk * 4
    return blocks + params + work


# ---------------------------------------------------------------------------
# Wrapper
# ---------------------------------------------------------------------------
def cross_attention(query, key, value, params, *, batch_tile=None,
                    mxu_dtype=None):
    """query: (B, Sq, E); key/value: (B, Sk, E).  Returns (B, Sq, E)."""
    B, Sq, E = query.shape
    _, Sk, _ = key.shape
    w_packed, vec_packed = params            # (E, n_proj), (8, E)
    n_proj = w_packed.shape[-1]
    scale = 1.0 / (E ** 0.5)

    # bf16 MXU operands / f32 accumulation is the native full-rate MXU path on
    # v5e/v6e/v7x; elementwise softmax/LN math stays f32 in the kernel.
    # Pass mxu_dtype=jnp.float32 for exact parity with the PyTorch reference.
    if mxu_dtype is None:
        mxu_dtype = jnp.bfloat16

    two_cores, vmem_budget, scoped_default = _device_info()
    in_item = jnp.dtype(query.dtype).itemsize
    par_item = jnp.dtype(w_packed.dtype).itemsize

    TB = batch_tile if batch_tile is not None else _choose_batch_tile(
        B, Sq, Sk, E, in_item, two_cores=two_cores, vmem_budget=vmem_budget)
    n_steps = pl.cdiv(B, TB)
    B_pad = n_steps * TB
    if B_pad != B:
        # Rare fallback (TB normally divides B): pad the ragged tail.
        pad = [(0, B_pad - B), (0, 0), (0, 0)]
        query = jnp.pad(query, pad)
        key = jnp.pad(key, pad)
        value = jnp.pad(value, pad)

    kernel = functools.partial(_cross_attention_kernel, scale=scale,
                               mxu_dtype=mxu_dtype)

    cp_kwargs = dict(dimension_semantics=("parallel",))
    est_vmem = _estimate_vmem_bytes(TB, Sq, Sk, E, n_proj, in_item, in_item,
                                    par_item)
    if est_vmem > scoped_default:
        # Raise the scoped-VMEM ceiling (16 MiB default on v5e, 32 MiB on
        # v6e/v7x) up to the generation budget.
        cp_kwargs["vmem_limit_bytes"] = int(vmem_budget)

    # Single-buffer the grid-invariant params only when the dead second
    # buffer would be >= 1 MiB (matters on v7x's 64 MiB VMEM at large E).
    param_bytes = (E * n_proj + 8 * E) * par_item
    want_single_buffer = param_bytes >= (1 << 20)

    seq_spec = lambda s: pl.BlockSpec((TB, s, E), lambda b: (b, 0, 0))

    def _build(single_buffer_params):
        if single_buffer_params:
            w_spec = pl.BlockSpec((E, n_proj), lambda b: (0, 0),
                                  pipeline_mode=pl.Buffered(1))
            vec_spec = pl.BlockSpec((8, E), lambda b: (0, 0),
                                    pipeline_mode=pl.Buffered(1))
        else:
            w_spec = pl.BlockSpec((E, n_proj), lambda b: (0, 0))
            vec_spec = pl.BlockSpec((8, E), lambda b: (0, 0))
        return pl.pallas_call(
            kernel,
            out_shape=jax.ShapeDtypeStruct((B_pad, Sq, E), query.dtype),
            grid_spec=pltpu.PrefetchScalarGridSpec(
                num_scalar_prefetch=0,
                grid=(n_steps,),
                in_specs=[
                    seq_spec(Sq),   # query
                    seq_spec(Sk),   # key
                    seq_spec(Sk),   # value
                    w_spec,         # packed [Wq | Wk | Wv | 0-pad]
                    vec_spec,       # packed bq/bk/bv/gamma/beta (+ zero rows)
                ],
                out_specs=seq_spec(Sq),
            ),
            compiler_params=pltpu.CompilerParams(**cp_kwargs),
        )

    operands = (query, key, value, w_packed, vec_packed)
    if want_single_buffer:
        try:
            out = _build(True)(*operands)
        except Exception:
            # pl.Buffered(1) pipeline_mode unsupported on this jax version —
            # fall back to default double-buffered params.
            out = _build(False)(*operands)
    else:
        out = _build(False)(*operands)

    return out[:B] if B_pad != B else out


# ---------------------------------------------------------------------------
# Parameters / reference
# ---------------------------------------------------------------------------
def init_params(key, emb_dim=EMB_DIM, dtype=jnp.float32):
    """Deterministic synthetic parameters, packed for the kernel.

    Weights are stored pre-transposed (y = x @ W + b, W == torch_weight.T) and
    packed column-wise as [Wq | Wk | Wv] zero-padded to a 128-lane multiple;
    the five E-vectors (bq, bk, bv, gamma, beta) are packed into one (8, E)
    slab (rows 5-7 are zero padding).
    """
    ks = jax.random.split(key, 6)
    bound = 1.0 / (emb_dim ** 0.5)
    wq = jax.random.uniform(ks[0], (emb_dim, emb_dim), dtype, -bound, bound)
    wk = jax.random.uniform(ks[2], (emb_dim, emb_dim), dtype, -bound, bound)
    wv = jax.random.uniform(ks[4], (emb_dim, emb_dim), dtype, -bound, bound)
    bq = jax.random.uniform(ks[1], (emb_dim,), dtype, -bound, bound)
    bk = jax.random.uniform(ks[3], (emb_dim,), dtype, -bound, bound)
    bv = jax.random.uniform(ks[5], (emb_dim,), dtype, -bound, bound)
    gamma = jnp.ones((emb_dim,), dtype)
    beta = jnp.zeros((emb_dim,), dtype)

    n_proj = _round_up(3 * emb_dim, 128)
    w_cat = jnp.concatenate([wq, wk, wv], axis=1)          # (E, 3E)
    w_packed = (jnp.zeros((emb_dim, n_proj), dtype)
                .at[:, :3 * emb_dim].set(w_cat))           # (E, n_proj)
    vec_packed = (jnp.zeros((8, emb_dim), dtype)
                  .at[0].set(bq).at[1].set(bk).at[2].set(bv)
                  .at[3].set(gamma).at[4].set(beta))       # (8, E)
    return w_packed, vec_packed


def cross_attention_ref(query, key, value, params):
    """Pure-JAX reference matching the PyTorch forward."""
    w_packed, vec_packed = params
    E = query.shape[-1]
    wq = w_packed[:, 0:E]
    wk = w_packed[:, E:2 * E]
    wv = w_packed[:, 2 * E:3 * E]
    bq, bk, bv, gamma, beta = (vec_packed[i] for i in range(5))
    qp = query @ wq + bq
    kp = key @ wk + bk
    vp = value @ wv + bv
    scores = jnp.einsum("bqe,bke->bqk", qp, kp) / (E ** 0.5)
    w = jax.nn.softmax(scores, axis=-1)
    att = jnp.einsum("bqk,bke->bqe", w, vp)
    mean = att.mean(-1, keepdims=True)
    var = ((att - mean) ** 2).mean(-1, keepdims=True)
    return (att - mean) / jnp.sqrt(var + LN_EPS) * gamma + beta


if __name__ == "__main__":
    root = jax.random.PRNGKey(0)
    k_q, k_k, k_v, k_p, k_q2, k_k2, k_v2 = jax.random.split(root, 7)

    E = EMB_DIM
    params = init_params(k_p, E)

    # --- Shape set 1: small demo (B=8, Sq=Sk=8, E=64) ------------------------
    B, Sq, Sk = 8, 8, 8
    q = jax.random.normal(k_q, (B, Sq, E), jnp.float32)
    k = jax.random.normal(k_k, (B, Sk, E), jnp.float32)
    v = jax.random.normal(k_v, (B, Sk, E), jnp.float32)
    ref = cross_attention_ref(q, k, v, params)

    # Exact-parity path (f32 MXU operands).
    out_exact = jax.block_until_ready(
        cross_attention(q, k, v, params, mxu_dtype=jnp.float32))
    assert out_exact.shape == (B, Sq, E)
    err = float(jnp.max(jnp.abs(out_exact - ref)))
    assert jnp.allclose(out_exact, ref, atol=1e-4, rtol=1e-4), \
        f"exact path max abs err = {err}"

    # Default fast path (bf16 MXU operands, f32 accumulation / elementwise).
    out_fast = jax.block_until_ready(cross_attention(q, k, v, params))
    err_fast = float(jnp.max(jnp.abs(out_fast - ref)))
    assert jnp.allclose(out_fast, ref, atol=3e-2, rtol=3e-2), \
        f"bf16 path max abs err = {err_fast}"

    # --- Shape set 2: multi-step grid, Sq != Sk, divisor batch tile ----------
    B2, Sq2, Sk2 = 48, 16, 24
    q2 = jax.random.normal(k_q2, (B2, Sq2, E), jnp.float32)
    k2 = jax.random.normal(k_k2, (B2, Sk2, E), jnp.float32)
    v2 = jax.random.normal(k_v2, (B2, Sk2, E), jnp.float32)
    ref2 = cross_attention_ref(q2, k2, v2, params)
    out2 = jax.block_until_ready(cross_attention(q2, k2, v2, params))
    err2 = float(jnp.max(jnp.abs(out2 - ref2)))
    assert jnp.allclose(out2, ref2, atol=3e-2, rtol=3e-2), \
        f"multi-step grid max abs err = {err2}"

    print("KERNEL_OK")
</pallas_src>

<mosaic_0001>
module attributes {stable_mosaic.version = 11 : i64} {
  func.func @_cross_attention_kernel(%arg0: i32, %arg1: memref<8x8x64xf32, #tpu.memory_space<vmem>>, %arg2: memref<8x8x64xf32, #tpu.memory_space<vmem>>, %arg3: memref<8x8x64xf32, #tpu.memory_space<vmem>>, %arg4: memref<64x256xf32, #tpu.memory_space<vmem>>, %arg5: memref<8x64xf32, #tpu.memory_space<vmem>>, %arg6: memref<8x8x64xf32, #tpu.memory_space<vmem>>) attributes {dimension_semantics = [#tpu.dimension_semantics<parallel>], iteration_bounds = array<i64: 1>, scalar_prefetch = 0 : i64, scratch_operands = 0 : i64, tpu.core_type = #tpu.core_type<tc>, window_params = [{transform_indices = @transform_0, window_bounds = array<i64: 8, 8, 64>}, {transform_indices = @transform_1, window_bounds = array<i64: 8, 8, 64>}, {transform_indices = @transform_2, window_bounds = array<i64: 8, 8, 64>}, {pipeline_mode = #tpu.pipeline_mode<synchronous>, transform_indices = @transform_3, window_bounds = array<i64: 64, 256>}, {pipeline_mode = #tpu.pipeline_mode<synchronous>, transform_indices = @transform_4, window_bounds = array<i64: 8, 64>}, {transform_indices = @transform_5, window_bounds = array<i64: 8, 8, 64>}]} {
    %c0 = arith.constant 0 : index
    %c0_0 = arith.constant 0 : index
    %c0_1 = arith.constant 0 : index
    %0 = vector.load %arg1[%c0, %c0_0, %c0_1] : memref<8x8x64xf32, #tpu.memory_space<vmem>>, vector<8x8x64xf32>
    %1 = vector.shape_cast %0 : vector<8x8x64xf32> to vector<64x64xf32>
    %c0_2 = arith.constant 0 : index
    %c0_3 = arith.constant 0 : index
    %c0_4 = arith.constant 0 : index
    %2 = vector.load %arg2[%c0_2, %c0_3, %c0_4] : memref<8x8x64xf32, #tpu.memory_space<vmem>>, vector<8x8x64xf32>
    %3 = vector.shape_cast %2 : vector<8x8x64xf32> to vector<64x64xf32>
    %c0_5 = arith.constant 0 : index
    %c0_6 = arith.constant 0 : index
    %c0_7 = arith.constant 0 : index
    %4 = vector.load %arg3[%c0_5, %c0_6, %c0_7] : memref<8x8x64xf32, #tpu.memory_space<vmem>>, vector<8x8x64xf32>
    %5 = vector.shape_cast %4 : vector<8x8x64xf32> to vector<64x64xf32>
    %6 = tpu.concatenate %1, %3, %5 in 0 : vector<64x64xf32>, vector<64x64xf32>, vector<64x64xf32> -> vector<192x64xf32>
    %c0_8 = arith.constant 0 : index
    %c0_9 = arith.constant 0 : index
    %7 = vector.load %arg4[%c0_8, %c0_9] : memref<64x256xf32, #tpu.memory_space<vmem>>, vector<64x256xf32>
    %cst = arith.constant dense<0.000000e+00> : vector<192x256xf32>
    %8 = tpu.matmul %6, %7, %cst {dimension_numbers = #tpu.dot_dimension_numbers<[1], [0], [0], [1], [0, 0, 1, 1], [], []>} : vector<192x64xf32>, vector<64x256xf32>, vector<192x256xf32> -> vector<192x256xf32>
    %c0_10 = arith.constant 0 : index
    %c0_11 = arith.constant 0 : index
    %9 = vector.load %arg5[%c0_10, %c0_11] : memref<8x64xf32, #tpu.memory_space<vmem>>, vector<1x64xf32>
    %c1 = arith.constant 1 : index
    %c0_12 = arith.constant 0 : index
    %10 = vector.load %arg5[%c1, %c0_12] : memref<8x64xf32, #tpu.memory_space<vmem>>, vector<1x64xf32>
    %c2 = arith.constant 2 : index
    %c0_13 = arith.constant 0 : index
    %11 = vector.load %arg5[%c2, %c0_13] : memref<8x64xf32, #tpu.memory_space<vmem>>, vector<1x64xf32>
    %c3 = arith.constant 3 : index
    %c0_14 = arith.constant 0 : index
    %12 = vector.load %arg5[%c3, %c0_14] : memref<8x64xf32, #tpu.memory_space<vmem>>, vector<1x64xf32>
    %c4 = arith.constant 4 : index
    %c0_15 = arith.constant 0 : index
    %13 = vector.load %arg5[%c4, %c0_15] : memref<8x64xf32, #tpu.memory_space<vmem>>, vector<1x64xf32>
    %14 = vector.extract_strided_slice %8 {offsets = [0, 0], sizes = [64, 64], strides = [1, 1]} : vector<192x256xf32> to vector<64x64xf32>
    %15 = vector.broadcast %9 : vector<1x64xf32> to vector<64x64xf32>
    %16 = arith.addf %14, %15 : vector<64x64xf32>
    %17 = vector.shape_cast %16 : vector<64x64xf32> to vector<8x8x64xf32>
    %18 = vector.extract_strided_slice %8 {offsets = [64, 64], sizes = [64, 64], strides = [1, 1]} : vector<192x256xf32> to vector<64x64xf32>
    %19 = vector.broadcast %10 : vector<1x64xf32> to vector<64x64xf32>
    %20 = arith.addf %18, %19 : vector<64x64xf32>
    %21 = vector.shape_cast %20 : vector<64x64xf32> to vector<8x8x64xf32>
    %22 = vector.extract_strided_slice %8 {offsets = [128, 128], sizes = [64, 64], strides = [1, 1]} : vector<192x256xf32> to vector<64x64xf32>
    %23 = vector.broadcast %11 : vector<1x64xf32> to vector<64x64xf32>
    %24 = arith.addf %22, %23 : vector<64x64xf32>
    %25 = vector.shape_cast %24 : vector<64x64xf32> to vector<8x8x64xf32>
    "tpu.trace_start"() <{level = 10 : i32, message = "bqe,bke->bqk"}> : () -> ()
    %cst_16 = arith.constant dense<0.000000e+00> : vector<8x8x8xf32>
    %26 = tpu.matmul %17, %21, %cst_16 {dimension_numbers = #tpu.dot_dimension_numbers<[2], [2], [1], [1], [0, 0, 0, 1, 1, 1], [0], [0]>} : vector<8x8x64xf32>, vector<8x8x64xf32>, vector<8x8x8xf32> -> vector<8x8x8xf32>
    "tpu.trace_stop"() : () -> ()
    %cst_17 = arith.constant 1.250000e-01 : f32
    %27 = vector.broadcast %cst_17 : f32 to vector<8x8x8xf32>
    %28 = arith.mulf %26, %27 : vector<8x8x8xf32>
    %cst_18 = arith.constant dense<0xFF800000> : vector<8x8xf32>
    %29 = vector.multi_reduction <maximumf>, %28, %cst_18 [2] : vector<8x8x8xf32> to vector<8x8xf32>
    %30 = vector.shape_cast %29 : vector<8x8xf32> to vector<8x8x1xf32>
    %31 = vector.broadcast %30 : vector<8x8x1xf32> to vector<8x8x8xf32>
    %32 = arith.subf %28, %31 : vector<8x8x8xf32>
    %33 = math.exp %32 : vector<8x8x8xf32>
    %cst_19 = arith.constant dense<0.000000e+00> : vector<8x8xf32>
    %34 = vector.multi_reduction <add>, %33, %cst_19 [2] : vector<8x8x8xf32> to vector<8x8xf32>
    %35 = vector.shape_cast %34 : vector<8x8xf32> to vector<8x8x1xf32>
    %36 = tpu.reciprocal %35 : vector<8x8x1xf32> -> vector<8x8x1xf32>
    %37 = vector.broadcast %36 : vector<8x8x1xf32> to vector<8x8x8xf32>
    %38 = arith.mulf %33, %37 : vector<8x8x8xf32>
    "tpu.trace_start"() <{level = 10 : i32, message = "bqk,bke->bqe"}> : () -> ()
    %cst_20 = arith.constant dense<0.000000e+00> : vector<8x8x64xf32>
    %39 = tpu.matmul %38, %25, %cst_20 {dimension_numbers = #tpu.dot_dimension_numbers<[2], [1], [1], [2], [0, 0, 0, 1, 1, 2], [0], [0]>} : vector<8x8x8xf32>, vector<8x8x64xf32>, vector<8x8x64xf32> -> vector<8x8x64xf32>
    "tpu.trace_stop"() : () -> ()
    %40 = vector.shape_cast %39 : vector<8x8x64xf32> to vector<64x64xf32>
    %cst_21 = arith.constant dense<0.000000e+00> : vector<64xf32>
    %41 = vector.multi_reduction <add>, %40, %cst_21 [1] : vector<64x64xf32> to vector<64xf32>
    %42 = vector.shape_cast %41 : vector<64xf32> to vector<64x1xf32>
    %cst_22 = arith.constant 6.400000e+01 : f32
    %43 = vector.broadcast %cst_22 : f32 to vector<64x1xf32>
    %44 = arith.divf %42, %43 : vector<64x1xf32>
    %45 = vector.broadcast %44 : vector<64x1xf32> to vector<64x64xf32>
    %46 = arith.subf %40, %45 : vector<64x64xf32>
    %47 = arith.mulf %46, %46 : vector<64x64xf32>
    %cst_23 = arith.constant dense<0.000000e+00> : vector<64xf32>
    %48 = vector.multi_reduction <add>, %47, %cst_23 [1] : vector<64x64xf32> to vector<64xf32>
    %49 = vector.shape_cast %48 : vector<64xf32> to vector<64x1xf32>
    %cst_24 = arith.constant 6.400000e+01 : f32
    %50 = vector.broadcast %cst_24 : f32 to vector<64x1xf32>
    %51 = arith.divf %49, %50 : vector<64x1xf32>
    %cst_25 = arith.constant 9.99999974E-6 : f32
    %52 = vector.broadcast %cst_25 : f32 to vector<64x1xf32>
    %53 = arith.addf %51, %52 : vector<64x1xf32>
    %54 = math.rsqrt %53 : vector<64x1xf32>
    %55 = vector.broadcast %54 : vector<64x1xf32> to vector<64x64xf32>
    %56 = arith.mulf %46, %55 : vector<64x64xf32>
    %57 = vector.broadcast %12 : vector<1x64xf32> to vector<64x64xf32>
    %58 = arith.mulf %56, %57 : vector<64x64xf32>
    %59 = vector.broadcast %13 : vector<1x64xf32> to vector<64x64xf32>
    %60 = arith.addf %58, %59 : vector<64x64xf32>
    %61 = vector.shape_cast %60 : vector<64x64xf32> to vector<8x8x64xf32>
    %c0_26 = arith.constant 0 : index
    %c0_27 = arith.constant 0 : index
    %c0_28 = arith.constant 0 : index
    %62 = vector.load %arg6[%c0_26, %c0_27, %c0_28] : memref<8x8x64xf32, #tpu.memory_space<vmem>>, vector<8x8x64xf32>
    tpu.vector_store %arg6[%c0_26, %c0_27, %c0_28], %61 {strides = array<i32>} : memref<8x8x64xf32, #tpu.memory_space<vmem>>, vector<8x8x64xf32>,
    return
  }
  func.func @transform_0(%arg0: i32) -> (i32, i32, i32) {
    %c0_i32 = arith.constant 0 : i32
    %c0_i32_0 = arith.constant 0 : i32
    %c0_i32_1 = arith.constant 0 : i32
    return %arg0, %c0_i32, %c0_i32_0 : i32, i32, i32
  }
  func.func @transform_1(%arg0: i32) -> (i32, i32, i32) {
    %c0_i32 = arith.constant 0 : i32
    %c0_i32_0 = arith.constant 0 : i32
    %c0_i32_1 = arith.constant 0 : i32
    return %arg0, %c0_i32, %c0_i32_0 : i32, i32, i32
  }
  func.func @transform_2(%arg0: i32) -> (i32, i32, i32) {
    %c0_i32 = arith.constant 0 : i32
    %c0_i32_0 = arith.constant 0 : i32
    %c0_i32_1 = arith.constant 0 : i32
    return %arg0, %c0_i32, %c0_i32_0 : i32, i32, i32
  }
  func.func @transform_3(%arg0: i32) -> (i32, i32) {
    %c0_i32 = arith.constant 0 : i32
    %c0_i32_0 = arith.constant 0 : i32
    %c0_i32_1 = arith.constant 0 : i32
    return %c0_i32, %c0_i32_0 : i32, i32
  }
  func.func @transform_4(%arg0: i32) -> (i32, i32) {
    %c0_i32 = arith.constant 0 : i32
    %c0_i32_0 = arith.constant 0 : i32
    %c0_i32_1 = arith.constant 0 : i32
    return %c0_i32, %c0_i32_0 : i32, i32
  }
  func.func @transform_5(%arg0: i32) -> (i32, i32, i32) {
    %c0_i32 = arith.constant 0 : i32
    %c0_i32_0 = arith.constant 0 : i32
    %c0_i32_1 = arith.constant 0 : i32
    return %arg0, %c0_i32, %c0_i32_0 : i32, i32, i32
  }
}

</mosaic_0001>

<bundles_post_ra>
// kernel: tpu_custom_call.1
= control target key start
LH: loop header
LB: loop body
LE: loop exit
PB: predicated region body
PF: predicated region fallthrough
CT: control target
= control target key end

     0   :  { %10 = vsyncpa [#allocation3], 0  ;;  %s2606_s0 = inlined_call_operand.hbm [shape: f32[8,8,64], index: 0, kind: input, shape index: {}]   ;;  %s2607_s1 = inlined_call_operand.hbm [shape: f32[8,8,64], index: 1, kind: input, shape index: {}]   ;;  %s2608_s2 = inlined_call_operand.hbm [shape: f32[8,8,64], index: 2, kind: input, shape index: {}]   ;;  %s2609_s3 = inlined_call_operand.hbm [shape: f32[64,256], index: 3, kind: input, shape index: {}]   ;;  %s2610_s4 = inlined_call_operand.hbm [shape: f32[8,64], index: 4, kind: input, shape index: {}]   ;;  %s2611_s5 = inlined_call_operand.hbm [shape: f32[8,8,64], index: 5, kind: output, shape index: {}]  }
   0x1   :  { %11 = vsyncpa [#allocation6], 0 }
   0x2   :  { %12 = vsyncpa [#allocation9], 0 }
   0x3   :  { %13 = vsyncpa [#allocation4], 0  ;;  %s2261_s18 = smov [#allocation5]   ;;  %s2262_s20 = smov [#allocation8]  }
   0x4   :  { %s31_s19 = sshll.u32 %s2261_s18, 4  ;;  %s55_s21 = sshll.u32 %s2262_s20, 4  ;;  %s32_s19 = int_to_ptr.vmem [resolvable:$true] %s31_s19  ;;  %s56_s21 = int_to_ptr.vmem [resolvable:$true] %s55_s21 }
   0x5   :  { %s2141_s22 = scalar_lea.vmem %s32_s19, 1024  ;;  %p2146_p1 = scmp.lt.s32.totalorder %s32_s19, %s32_s19 }
   0x6   :  { %p2142_p0 = scmp.ne.s32.totalorder %s32_s19, %s2141_s22  ;;  %p2147_p2 = scmp.lt.s32.totalorder %s2141_s22, %s2141_s22 }
   0x8   :  { %p2148_p3 = por %p2147_p2, %p2146_p1 }
   0xa   :  { %p2149_p4 = pnand %p2148_p3, %p2142_p0 }
   0xc   :  { %2152 = shalt.err (!%p2149_p4)
}
   0xd   :  { %s2263_s23 = smov 128   ;;  %s2264_s24 = smov 8  }
   0xe   :  { %37 = dma.hbm_to_vmem [thread:$0]  %s2607_s1, 1024, %s32_s19, [#allocation6], %s2263_s23, %s2263_s23, %s2264_s24  }
   0xf   :  { %s2161_s27 = scalar_lea.vmem %s56_s21, 2048  ;;  %p2166_p6 = scmp.lt.s32.totalorder %s56_s21, %s56_s21 }
  0x10   :  { %p2162_p5 = scmp.ne.s32.totalorder %s56_s21, %s2161_s27  ;;  %p2167_p7 = scmp.lt.s32.totalorder %s2161_s27, %s2161_s27 }
  0x12   :  { %p2168_p8 = por %p2167_p7, %p2166_p6 }
  0x14   :  { %p2169_p9 = pnand %p2168_p8, %p2162_p5 }
  0x16   :  { %2172 = shalt.err (!%p2169_p9)
}
  0x17   :  { %s2265_s28 = smov 256   ;;  %s2266_s29 = smov 16  }
  0x18   :  { %61 = dma.hbm_to_vmem [thread:$0]  %s2609_s3, 2048, %s56_s21, [#allocation9], %s2265_s28, %s2265_s28, %s2266_s29  }
  0x19   :  { %s2267_s7 = smov [#allocation2]   ;;  %s2268_s9 = smov [#allocation7]  }
  0x1a   :  { %s19_s8 = sshll.u32 %s2267_s7, 4  ;;  %s43_s10 = sshll.u32 %s2268_s9, 4  ;;  %s20_s8 = int_to_ptr.vmem [resolvable:$true] %s19_s8  ;;  %s44_s10 = int_to_ptr.vmem [resolvable:$true] %s43_s10 }
  0x1b   :  { %s2181_s1 = scalar_lea.vmem %s20_s8, 1024  ;;  %p2186_p11 = scmp.lt.s32.totalorder %s20_s8, %s20_s8 }
  0x1c   :  { %p2182_p10 = scmp.ne.s32.totalorder %s20_s8, %s2181_s1  ;;  %p2187_p12 = scmp.lt.s32.totalorder %s2181_s1, %s2181_s1 }
  0x1e   :  { %p2188_p13 = por %p2187_p12, %p2186_p11 }
  0x20   :  { %p2189_p0 = pnand %p2188_p13, %p2182_p10 }
  0x22   :  { %2192 = shalt.err (!%p2189_p0)
}
  0x23   :  { %25 = dma.hbm_to_vmem [thread:$0]  %s2606_s0, 1024, %s20_s8, [#allocation3], %s2263_s23, %s2263_s23, %s2264_s24  }
  0x24   :  { %s2201_s3 = scalar_lea.vmem %s44_s10, 1024  ;;  %p2206_p2 = scmp.lt.s32.totalorder %s44_s10, %s44_s10 }
  0x25   :  { %p2202_p1 = scmp.ne.s32.totalorder %s44_s10, %s2201_s3  ;;  %p2207_p3 = scmp.lt.s32.totalorder %s2201_s3, %s2201_s3 }
  0x27   :  { %p2208_p4 = por %p2207_p3, %p2206_p2 }
  0x29   :  { %p2209_p5 = pnand %p2208_p4, %p2202_p1 }
  0x2b   :  { %2212 = shalt.err (!%p2209_p5)
}
  0x2c   :  { %49 = dma.hbm_to_vmem [thread:$0]  %s2608_s2, 1024, %s44_s10, [#allocation6], %s2263_s23, %s2263_s23, %s2264_s24  }
  0x2d   :  { %s2269_s15 = smov [#allocation10]  }
  0x2e   :  { %s68_s16 = sshll.u32 %s2269_s15, 4  ;;  %s69_s16 = int_to_ptr.vmem [resolvable:$true] %s68_s16 }
  0x2f   :  { %s2221_s17 = scalar_lea.vmem %s69_s16, 128  ;;  %p2226_p7 = scmp.lt.s32.totalorder %s69_s16, %s69_s16 }
  0x30   :  { %p2222_p6 = scmp.ne.s32.totalorder %s69_s16, %s2221_s17  ;;  %p2227_p8 = scmp.lt.s32.totalorder %s2221_s17, %s2221_s17 }
  0x32   :  { %p2228_p9 = por %p2227_p8, %p2226_p7 }
  0x34   :  { %p2229_p10 = pnand %p2228_p9, %p2222_p6 }
  0x36   :  { %2232 = shalt.err (!%p2229_p10)
}
  0x37   :  { %71 = dma.hbm_to_vmem [thread:$0]  %s2610_s4, 128, %s69_s16, [#allocation9]  }
  0x38   :  { %2253 = dma.done.wait [#allocation3], 1024  }
  0x39   :  { %2254 = vsyncadd [#allocation3], 4294966272 }
  0x3a   :  { %2255 = dma.done.wait [#allocation6], 2048  }
  0x3b   :  { %2256 = vsyncadd [#allocation6], 4294965248 }
  0x3c   :  { %2257 = dma.done.wait [#allocation9], 2176  }
  0x3d   :  { %2258 = vsyncadd [#allocation9], 4294965120  ;;  %v2270_v0 = vmov 0.0   ;;  %v126_v1 = vld [vmem:[#allocation8 + $0x78] sm:$0xff]  ;;  %v125_v2 = vld [vmem:[#allocation8 + $0x70] sm:$0xff]  ;;  %s2271_s2 = smov 64  }
  0x3e   :  { %264 = vmatprep.mubr.f32.mxu0 %v2270_v0  ;;  %364 = vmatprep.mubr.f32.mxu1 %v2270_v0  ;;  %v124_v3 = vld [vmem:[#allocation8 + $0x68] sm:$0xff]  ;;  %v123_v4 = vld [vmem:[#allocation8 + $0x60] sm:$0xff]  ;;  %v122_v5 = vld [vmem:[#allocation8 + $0x58] sm:$0xff]  ;;  %vm127_vm0 = vcmask 523264   ;;  %vm2272_vm1 = vmmov 0   ;;  %vm1062_vm2 = vcmask 64512  }
  0x3f   :  { %216 = vmatprep.subr.mxu0 %v126_v1  ;;  %2056 = vmatprep.subr.mxu1 %v126_v1  ;;  %v121_v6 = vld [vmem:[#allocation8 + $0x50] sm:$0xff]  ;;  %v120_v7 = vld [vmem:[#allocation8 + $0x48] sm:$0xff]  ;;  %v119_v8 = vld [vmem:[#allocation8 + $0x40] sm:$0xff]  ;;  %s2273_s4 = smov [#allocation11]  }
  0x40   :  { %217 = vmatpush1.msra.mxu0 %v125_v2  ;;  %2064 = vmatpush1.msra.mxu1 %v125_v2  ;;  %v118_v9 = vld [vmem:[#allocation8 + $0x38] sm:$0xff]  ;;  %v117_v10 = vld [vmem:[#allocation8 + $0x30] sm:$0xff]  ;;  %v116_v11 = vld [vmem:[#allocation8 + $0x28] sm:$0xff]  ;;  %s1877_s19 = sshll.u32 %s2273_s4, 4  ;;  %s1878_s19 = int_to_ptr.vmem [resolvable:$true] %s1877_s19 }
  0x41   :  { %218 = vmatprep.subr.mxu0 %v124_v3  ;;  %2057 = vmatprep.subr.mxu1 %v124_v3  ;;  %v115_v12 = vld [vmem:[#allocation8 + $0x20] sm:$0xff]  ;;  %v114_v13 = vld [vmem:[#allocation8 + $0x18] sm:$0xff]  ;;  %v113_v15 = vld [vmem:[#allocation8 + $0x10] sm:$0xff]  ;;  %s2233_s20 = scalar_lea.vmem %s1878_s19, 1024  ;;  %p2238_p12 = scmp.lt.s32.totalorder %s1878_s19, %s1878_s19 }
  0x42   :  { %219 = vmatpush1.msra.mxu0 %v123_v4  ;;  %2065 = vmatpush1.msra.mxu1 %v123_v4  ;;  %v1916_v14 = vld [vmem:[#allocation10 + $0x1] ss:$0 sm:$0xff]  ;;  %v112_v16 = vld [vmem:[#allocation8 + $0x8] sm:$0xff]  ;;  %v89_v20 = vld [vmem:[#allocation2 + $0x10] sm:$0xff]  ;;  %p2234_p11 = scmp.ne.s32.totalorder %s1878_s19, %s2233_s20  ;;  %p2239_p13 = scmp.lt.s32.totalorder %s2233_s20, %s2233_s20 }
  0x43   :  { %220 = vmatprep.subr.mxu0 %v122_v5  ;;  %2058 = vmatprep.subr.mxu1 %v122_v5  ;;  %v111_v17 = vld [vmem:[#allocation8] sm:$0xff]  ;;  %v88_v19 = vld [vmem:[#allocation2 + $0x8] sm:$0xff]  ;;  %v90_v21 = vld [vmem:[#allocation2 + $0x18] sm:$0xff] }
  0x44   :  { %221 = vmatpush1.msra.mxu0 %v121_v6  ;;  %2066 = vmatpush1.msra.mxu1 %v121_v6  ;;  %v87_v18 = vld [vmem:[#allocation2] sm:$0xff]  ;;  %v92_v23 = vld [vmem:[#allocation2 + $0x28] sm:$0xff]  ;;  %v93_v24 = vld [vmem:[#allocation2 + $0x30] sm:$0xff]  ;;  %p2240_p0 = por %p2239_p13, %p2238_p12 }
  0x45   :  { %222 = vmatprep.subr.mxu0 %v120_v7  ;;  %2059 = vmatprep.subr.mxu1 %v120_v7  ;;  %v91_v22 = vld [vmem:[#allocation2 + $0x20] sm:$0xff]  ;;  %v94_v25 = vld [vmem:[#allocation2 + $0x38] sm:$0xff]  ;;  %v96_v27 = vld [vmem:[#allocation5 + $0x8] sm:$0xff] }
  0x46   :  { %223 = vmatpush1.msra.mxu0 %v119_v8  ;;  %2067 = vmatpush1.msra.mxu1 %v119_v8  ;;  %v95_v26 = vld [vmem:[#allocation5] sm:$0xff]  ;;  %v97_v28 = vld [vmem:[#allocation5 + $0x10] sm:$0xff]  ;;  %v98_v29 = vld [vmem:[#allocation5 + $0x18] sm:$0xff]  ;;  %p2241_p1 = pnand %p2240_p0, %p2234_p11 }
  0x47   :  { %224 = vmatprep.subr.mxu0 %v118_v9  ;;  %2060 = vmatprep.subr.mxu1 %v118_v9  ;;  %v99_v30 = vld [vmem:[#allocation5 + $0x20] sm:$0xff]  ;;  %v100_v31 = vld [vmem:[#allocation5 + $0x28] sm:$0xff]  ;;  %v101_v32 = vld [vmem:[#allocation5 + $0x30] sm:$0xff] }
  0x48   :  { %225 = vmatpush1.msra.mxu0 %v117_v10  ;;  %2068 = vmatpush1.msra.mxu1 %v117_v10  ;;  %v102_v33 = vld [vmem:[#allocation5 + $0x38] sm:$0xff]  ;;  %v107_v34 = vld [vmem:[#allocation7 + $0x20] sm:$0xff]  ;;  %v108_v35 = vld [vmem:[#allocation7 + $0x28] sm:$0xff] }
  0x49   :  { %226 = vmatprep.subr.mxu0 %v116_v11  ;;  %407 = vrot.lane.b32.xlu0 %v1916_v14, %s2271_s2  ;;  %v109_v36 = vld [vmem:[#allocation7 + $0x30] sm:$0xff]  ;;  %v110_v37 = vld [vmem:[#allocation7 + $0x38] sm:$0xff] }
  0x4a   :  { %227 = vmatpush1.msra.mxu0 %v115_v12  ;;  %2061 = vmatprep.subr.mxu1 %v116_v11 }
  0x4b   :  { %228 = vmatprep.subr.mxu0 %v114_v13  ;;  %2069 = vmatpush1.msra.mxu1 %v115_v12 }
  0x4c   :  { %229 = vmatpush1.msra.mxu0 %v113_v15  ;;  %2062 = vmatprep.subr.mxu1 %v114_v13 }
  0x4d   :  { %230 = vmatprep.subr.mxu0 %v112_v16  ;;  %2070 = vmatpush1.msra.mxu1 %v113_v15 }
  0x4e   :  { %231 = vmatpush1.msra.mxu0 %v111_v17  ;;  %2063 = vmatprep.subr.mxu1 %v112_v16 }
  0x4f   :  { %1891 = vmatmul.mubr.msk.f32.vlgmr.msra.gmra.mxu0 %vm127_vm0, %v87_v18  ;;  %2071 = vmatpush1.msra.mxu1 %v111_v17 }
  0x50   :  { %269 = vmatprep.mubr.f32.mxu0 %v2270_v0  ;;  %1976 = vmatprep.subr.mxu1 %v2270_v0 }
  0x51   :  { %1911 = vmatmul.mubr.msk.f32.vlgmr.msra.gmra.mxu1 %vm127_vm0, %v107_v34 }
  0x52   :  { %369 = vmatprep.mubr.f32.mxu1 %v2270_v0 }
  0x53   :  { %1892 = vmatmul.mubr.msk.f32.gmra.mxu0 %vm127_vm0, %v88_v19 }
  0x54   :  { %274 = vmatprep.mubr.f32.mxu0 %v2270_v0 }
  0x55   :  { %1912 = vmatmul.mubr.msk.f32.gmra.mxu1 %vm127_vm0, %v108_v35 }
  0x56   :  { %374 = vmatprep.mubr.f32.mxu1 %v2270_v0 }
  0x57   :  { %1893 = vmatmul.mubr.msk.f32.gmra.mxu0 %vm127_vm0, %v89_v20 }
  0x58   :  { %279 = vmatprep.mubr.f32.mxu0 %v2270_v0 }
  0x59   :  { %1913 = vmatmul.mubr.msk.f32.gmra.mxu1 %vm127_vm0, %v109_v36 }
  0x5a   :  { %379 = vmatprep.mubr.f32.mxu1 %v2270_v0 }
  0x5b   :  { %1894 = vmatmul.mubr.msk.f32.gmra.mxu0 %vm127_vm0, %v90_v21 }
  0x5c   :  { %284 = vmatprep.mubr.f32.mxu0 %v2270_v0 }
  0x5d   :  { %1914 = vmatmul.mubr.msk.f32.gmra.mxu1 %vm127_vm0, %v110_v37 }
  0x5e   :  { %1978 = vmatprep.mubr.msk.f32.mxu1 %vm2272_vm1, %v2270_v0 }
  0x5f   :  { %1895 = vmatmul.mubr.msk.f32.gmra.mxu0 %vm127_vm0, %v91_v22 }
  0x60   :  { %289 = vmatprep.mubr.f32.mxu0 %v2270_v0 }
  0x63   :  { %1896 = vmatmul.mubr.msk.f32.gmra.mxu0 %vm127_vm0, %v92_v23  ;;  %v1915_v23 = vld [vmem:[#allocation10] ss:$0 sm:$0xff] }
  0x64   :  { %294 = vmatprep.mubr.f32.mxu0 %v2270_v0 }
  0x67   :  { %1897 = vmatmul.mubr.msk.f32.gmra.mxu0 %vm127_vm0, %v93_v24 }
  0x68   :  { %299 = vmatprep.mubr.f32.mxu0 %v2270_v0 }
  0x6b   :  { %1898 = vmatmul.mubr.msk.f32.gmra.mxu0 %vm127_vm0, %v94_v25 }
  0x6c   :  { %304 = vmatprep.mubr.f32.mxu0 %v2270_v0 }
  0x6f   :  { %1899 = vmatmul.mubr.msk.f32.gmra.mxu0 %vm127_vm0, %v95_v26 }
  0x70   :  { %309 = vmatprep.mubr.f32.mxu0 %v2270_v0 }
  0x73   :  { %1900 = vmatmul.mubr.msk.f32.gmra.mxu0 %vm127_vm0, %v96_v27 }
  0x74   :  { %314 = vmatprep.mubr.f32.mxu0 %v2270_v0 }
  0x77   :  { %1901 = vmatmul.mubr.msk.f32.gmra.mxu0 %vm127_vm0, %v97_v28 }
  0x78   :  { %319 = vmatprep.mubr.f32.mxu0 %v2270_v0 }
  0x7b   :  { %1902 = vmatmul.mubr.msk.f32.gmra.mxu0 %vm127_vm0, %v98_v29 }
  0x7c   :  { %324 = vmatprep.mubr.f32.mxu0 %v2270_v0 }
  0x7f   :  { %1903 = vmatmul.mubr.msk.f32.gmra.mxu0 %vm127_vm0, %v99_v30 }
  0x80   :  { %329 = vmatprep.mubr.f32.mxu0 %v2270_v0 }
  0x83   :  { %1904 = vmatmul.mubr.msk.f32.gmra.mxu0 %vm127_vm0, %v100_v31 }
  0x84   :  { %334 = vmatprep.mubr.f32.mxu0 %v2270_v0 }
  0x87   :  { %1905 = vmatmul.mubr.msk.f32.gmra.mxu0 %vm127_vm0, %v101_v32 }
  0x88   :  { %339 = vmatprep.mubr.f32.mxu0 %v2270_v0 }
  0x8b   :  { %1906 = vmatmul.mubr.msk.f32.gmra.mxu0 %vm127_vm0, %v102_v33 }
  0x8c   :  { %344 = vmatprep.mubr.f32.mxu0 %v2270_v0 }
  0xbb   :  { %v408_v54 = vpop.permute.xlu0 %407 }
 0x10f   :  { %v266_v38 = vpop.f32.mrf.mxu0 }
 0x110   :  { %v394_v25 = vadd.f32 %v1915_v23, %v266_v38 }
 0x111   :  { %v268_v39 = vpop.f32.mrf.mxu0  ;;  %v366_v16 = vpop.f32.mrf.mxu1 }
 0x113   :  { %v2371_v40 = vpop.f32.mrf.mxu0  ;;  %v2395_v17 = vpop.f32.mrf.mxu1 }
 0x114   :  { %v395_v27 = vadd.f32 %v1915_v23, %v2371_v40  ;;  %v103_v40 = vld [vmem:[#allocation7] sm:$0xff] }
 0x115   :  { %v273_v41 = vpop.f32.mrf.mxu0  ;;  %v371_v18 = vpop.f32.mrf.mxu1  ;;  %1907 = vmatmul.mubr.msk.f32.gmra.mxu0 %vm127_vm0, %v103_v40 }
 0x116   :  { %349 = vmatprep.mubr.f32.mxu0 %v2270_v0  ;;  %v104_v41 = vld [vmem:[#allocation7 + $0x8] sm:$0xff] }
 0x117   :  { %v2373_v42 = vpop.f32.mrf.mxu0  ;;  %v2397_v19 = vpop.f32.mrf.mxu1 }
 0x118   :  { %v396_v29 = vadd.f32 %v1915_v23, %v2373_v42  ;;  %v105_v42 = vld [vmem:[#allocation7 + $0x10] sm:$0xff] }
 0x119   :  { %v278_v43 = vpop.f32.mrf.mxu0  ;;  %v376_v20 = vpop.f32.mrf.mxu1  ;;  %1908 = vmatmul.mubr.msk.f32.gmra.mxu0 %vm127_vm0, %v104_v41 }
 0x11a   :  { %354 = vmatprep.mubr.f32.mxu0 %v2270_v0  ;;  %v106_v43 = vld [vmem:[#allocation7 + $0x18] sm:$0xff] }
 0x11b   :  { %v2375_v44 = vpop.f32.mrf.mxu0  ;;  %v2399_v21 = vpop.f32.mrf.mxu1 }
 0x11c   :  { %v397_v31 = vadd.f32 %v1915_v23, %v2375_v44 }
 0x11d   :  { %v283_v45 = vpop.f32.mrf.mxu0  ;;  %v381_v22 = vpop.f32.mrf.mxu1  ;;  %1909 = vmatmul.mubr.msk.f32.gmra.mxu0 %vm127_vm0, %v105_v42 }
 0x11e   :  { %359 = vmatprep.mubr.f32.mxu0 %v2270_v0 }
 0x11f   :  { %v2377_v46 = vpop.f32.mrf.mxu0  ;;  %v2455_v44 = vpop.f32.mrf.mxu1 }
 0x120   :  { %v398_v33 = vadd.f32 %v1915_v23, %v2377_v46 }
 0x121   :  { %v288_v47 = vpop.f32.mrf.mxu0  ;;  %1910 = vmatmul.mubr.msk.f32.gmra.mxu0 %vm127_vm0, %v106_v43 }
 0x123   :  { %v2379_v48 = vpop.f32.mrf.mxu0 }
 0x124   :  { %v399_v35 = vadd.f32 %v1915_v23, %v2379_v48 }
 0x125   :  { %v293_v49 = vpop.f32.mrf.mxu0 }
 0x127   :  { %v2383_v50 = vpop.f32.mrf.mxu0 }
 0x128   :  { %v400_v37 = vadd.f32 %v1915_v23, %v2383_v50 }
 0x129   :  { %v298_v51 = vpop.f32.mrf.mxu0 }
 0x12b   :  { %v2385_v52 = vpop.f32.mrf.mxu0 }
 0x12c   :  { %v401_v39 = vadd.f32 %v1915_v23, %v2385_v52 }
 0x12d   :  { %v303_v53 = vpop.f32.mrf.mxu0 }
 0x12f   :  { %v306_v55 = vpop.f32.mrf.mxu0 }
 0x130   :  { %v410_v56 = vadd.f32 %v408_v54, %v306_v55 }
 0x131   :  { %v308_v57 = vpop.f32.mrf.mxu0 }
 0x132   :  { %431 = vrot.lane.b32.xlu0 %v410_v56, %s2271_s2 }
 0x133   :  { %v311_v58 = vpop.f32.mrf.mxu0 }
 0x134   :  { %v411_v59 = vadd.f32 %v408_v54, %v311_v58 }
 0x135   :  { %v313_v60 = vpop.f32.mrf.mxu0 }
 0x136   :  { %509 = vrot.lane.b32.xlu1 %v411_v59, %s2271_s2 }
 0x137   :  { %v316_v61 = vpop.f32.mrf.mxu0 }
 0x138   :  { %v412_v62 = vadd.f32 %v408_v54, %v316_v61 }
 0x139   :  { %v318_v63 = vpop.f32.mrf.mxu0 }
 0x13a   :  { %587 = vrot.lane.b32.xlu1 %v412_v62, %s2271_s2 }
 0x13b   :  { %v321_v1 = vpop.f32.mrf.mxu0 }
 0x13c   :  { %v413_v2 = vadd.f32 %v408_v54, %v321_v1 }
 0x13d   :  { %v323_v3 = vpop.f32.mrf.mxu0 }
 0x13e   :  { %665 = vrot.lane.b32.xlu0 %v413_v2, %s2271_s2 }
 0x13f   :  { %v326_v4 = vpop.f32.mrf.mxu0 }
 0x140   :  { %v414_v5 = vadd.f32 %v408_v54, %v326_v4 }
 0x141   :  { %v328_v6 = vpop.f32.mrf.mxu0 }
 0x142   :  { %743 = vrot.lane.b32.xlu1 %v414_v5, %s2271_s2 }
 0x143   :  { %v331_v7 = vpop.f32.mrf.mxu0 }
 0x144   :  { %v415_v8 = vadd.f32 %v408_v54, %v331_v7 }
 0x145   :  { %v333_v9 = vpop.f32.mrf.mxu0 }
 0x146   :  { %821 = vrot.lane.b32.xlu0 %v415_v8, %s2271_s2 }
 0x147   :  { %v336_v10 = vpop.f32.mrf.mxu0 }
 0x148   :  { %v416_v11 = vadd.f32 %v408_v54, %v336_v10 }
 0x149   :  { %v338_v12 = vpop.f32.mrf.mxu0 }
 0x14a   :  { %899 = vrot.lane.b32.xlu1 %v416_v11, %s2271_s2 }
 0x14b   :  { %v341_v13 = vpop.f32.mrf.mxu0 }
 0x14c   :  { %v417_v14 = vadd.f32 %v408_v54, %v341_v13 }
 0x14d   :  { %v343_v15 = vpop.f32.mrf.mxu0 }
 0x14e   :  { %977 = vrot.lane.b32.xlu0 %v417_v14, %s2271_s2 }
 0x1a4   :  { %v432_v24 = vpop.permute.xlu0 %431 }
 0x1a5   :  { %1977 = vmatpush3.xpose.msk.msra.mxu1 %vm127_vm0, %v432_v24 }
 0x1a6   :  { %1981 = vmatprep.subr.mxu1 %v2270_v0 }
 0x1a8   :  { %1979 = vmatmul.mubr.msk.f32.vlgmr.msra.gmra.mxu1 %vm127_vm0, %v394_v25  ;;  %v510_v26 = vpop.permute.xlu1 %509 }
 0x1a9   :  { %1982 = vmatpush3.xpose.msk.msra.mxu1 %vm127_vm0, %v510_v26  ;;  %1983 = vmatprep.mubr.msk.f32.mxu1 %vm2272_vm1, %v2270_v0 }
 0x1aa   :  { %1986 = vmatprep.subr.mxu1 %v2270_v0 }
 0x1ac   :  { %1984 = vmatmul.mubr.msk.f32.vlgmr.msra.gmra.mxu1 %vm127_vm0, %v395_v27  ;;  %v588_v28 = vpop.permute.xlu1 %587 }
 0x1ad   :  { %1987 = vmatpush3.xpose.msk.msra.mxu1 %vm127_vm0, %v588_v28  ;;  %1988 = vmatprep.mubr.msk.f32.mxu1 %vm2272_vm1, %v2270_v0 }
 0x1ae   :  { %1991 = vmatprep.subr.mxu1 %v2270_v0 }
 0x1b0   :  { %1989 = vmatmul.mubr.msk.f32.vlgmr.msra.gmra.mxu1 %vm127_vm0, %v396_v29  ;;  %v666_v30 = vpop.permute.xlu0 %665 }
 0x1b1   :  { %1992 = vmatpush3.xpose.msk.msra.mxu1 %vm127_vm0, %v666_v30  ;;  %1993 = vmatprep.mubr.msk.f32.mxu1 %vm2272_vm1, %v2270_v0 }
 0x1b2   :  { %1996 = vmatprep.subr.mxu1 %v2270_v0 }
 0x1b4   :  { %1994 = vmatmul.mubr.msk.f32.vlgmr.msra.gmra.mxu1 %vm127_vm0, %v397_v31  ;;  %v744_v32 = vpop.permute.xlu1 %743 }
 0x1b5   :  { %1997 = vmatpush3.xpose.msk.msra.mxu1 %vm127_vm0, %v744_v32  ;;  %1998 = vmatprep.mubr.msk.f32.mxu1 %vm2272_vm1, %v2270_v0 }
 0x1b6   :  { %2001 = vmatprep.subr.mxu1 %v2270_v0 }
 0x1b8   :  { %1999 = vmatmul.mubr.msk.f32.vlgmr.msra.gmra.mxu1 %vm127_vm0, %v398_v33  ;;  %v822_v34 = vpop.permute.xlu0 %821 }
 0x1b9   :  { %2002 = vmatpush3.xpose.msk.msra.mxu1 %vm127_vm0, %v822_v34  ;;  %2003 = vmatprep.mubr.msk.f32.mxu1 %vm2272_vm1, %v2270_v0 }
 0x1ba   :  { %2006 = vmatprep.subr.mxu1 %v2270_v0 }
 0x1bc   :  { %2004 = vmatmul.mubr.msk.f32.vlgmr.msra.gmra.mxu1 %vm127_vm0, %v399_v35  ;;  %v900_v36 = vpop.permute.xlu1 %899 }
 0x1bd   :  { %2007 = vmatpush3.xpose.msk.msra.mxu1 %vm127_vm0, %v900_v36  ;;  %2008 = vmatprep.mubr.msk.f32.mxu1 %vm2272_vm1, %v2270_v0 }
 0x1be   :  { %2011 = vmatprep.subr.mxu1 %v2270_v0 }
 0x1c0   :  { %2009 = vmatmul.mubr.msk.f32.vlgmr.msra.gmra.mxu1 %vm127_vm0, %v400_v37  ;;  %v978_v38 = vpop.permute.xlu0 %977 }
 0x1c1   :  { %2012 = vmatpush3.xpose.msk.msra.mxu1 %vm127_vm0, %v978_v38  ;;  %2013 = vmatprep.mubr.msk.f32.mxu1 %vm2272_vm1, %v2270_v0 }
 0x1c2   :  { %2016 = vmatprep.subr.mxu1 %v2270_v0 }
 0x1c4   :  { %2014 = vmatmul.mubr.msk.f32.vlgmr.msra.gmra.mxu1 %vm127_vm0, %v401_v39 }
 0x1c5   :  { %2018 = vmatprep.mubr.msk.f32.mxu1 %vm2272_vm1, %v2270_v0 }
 0x1d5   :  { %v346_v14 = vpop.f32.mrf.mxu0 }
 0x268   :  { %v504_v45 = vpop.f32.mrf.mxu1 }
 0x269   :  { %v1054_v46 = vmul.f32 0.125, %v504_v45 }
 0x26a   :  { %v1980_v47 = vpop.f32.mrf.mxu1 }
 0x26b   :  { %v1063_v48 = vsel %vm1062_vm2, %v1054_v46, -inf }
 0x26c   :  { %v582_v49 = vpop.f32.mrf.mxu1  ;;  %1064 = vmax.xlane.f32.xlu1 %v1063_v48 }
 0x26d   :  { %v1055_v50 = vmul.f32 0.125, %v582_v49 }
 0x26e   :  { %v1985_v51 = vpop.f32.mrf.mxu1 }
 0x26f   :  { %v1066_v52 = vsel %vm1062_vm2, %v1055_v50, -inf }
 0x270   :  { %v660_v53 = vpop.f32.mrf.mxu1  ;;  %1067 = vmax.xlane.f32.xlu0 %v1066_v52 }
 0x271   :  { %v1056_v54 = vmul.f32 0.125, %v660_v53 }
 0x272   :  { %v1990_v55 = vpop.f32.mrf.mxu1 }
 0x273   :  { %v1069_v56 = vsel %vm1062_vm2, %v1056_v54, -inf  ;;  %v2480_v55 = vld [vmem:[#allocation10 + $0x2] ss:$0 sm:$0xff] }
 0x274   :  { %v738_v57 = vpop.f32.mrf.mxu1  ;;  %1070 = vmax.xlane.f32.xlu0 %v1069_v56  ;;  %v347_v56 = vpop.f32.mrf.mxu0 }
 0x275   :  { %v1057_v58 = vmul.f32 0.125, %v738_v57  ;;  %v422_v57 = vadd.f32 %v2480_v55, %v347_v56 }
 0x276   :  { %v1995_v59 = vpop.f32.mrf.mxu1 }
 0x277   :  { %v1072_v60 = vsel %vm1062_vm2, %v1057_v58, -inf  ;;  %v351_v59 = vpop.f32.mrf.mxu0  ;;  %2017 = vmatpush3.msra.mxu1 %v422_v57 }
 0x278   :  { %v816_v61 = vpop.f32.mrf.mxu1  ;;  %1073 = vmax.xlane.f32.xlu1 %v1072_v60  ;;  %2021 = vmatprep.subr.mxu1 %v2270_v0 }
 0x279   :  { %v1058_v62 = vmul.f32 0.125, %v816_v61  ;;  %v352_v61 = vpop.f32.mrf.mxu0 }
 0x27a   :  { %v2000_v63 = vpop.f32.mrf.mxu1 }
 0x27b   :  { %v1075_v1 = vsel %vm1062_vm2, %v1058_v62, -inf  ;;  %v356_v63 = vpop.f32.mrf.mxu0 }
 0x27c   :  { %v894_v2 = vpop.f32.mrf.mxu1  ;;  %1076 = vmax.xlane.f32.xlu0 %v1075_v1 }
 0x27d   :  { %v1059_v3 = vmul.f32 0.125, %v894_v2  ;;  %v357_v2 = vpop.f32.mrf.mxu0 }
 0x27e   :  { %v2005_v4 = vpop.f32.mrf.mxu1 }
 0x27f   :  { %v1078_v5 = vsel %vm1062_vm2, %v1059_v3, -inf }
 0x280   :  { %1079 = vmax.xlane.f32.xlu1 %v1078_v5  ;;  %v972_v6 = vpop.f32.mrf.mxu1 }
 0x281   :  { %v1060_v7 = vmul.f32 0.125, %v972_v6 }
 0x282   :  { %v2010_v8 = vpop.f32.mrf.mxu1 }
 0x283   :  { %v1081_v9 = vsel %vm1062_vm2, %v1060_v7, -inf }
 0x284   :  { %1082 = vmax.xlane.f32.xlu0 %v1081_v9  ;;  %v1050_v10 = vpop.f32.mrf.mxu1  ;;  %v423_v9 = vadd.f32 %v2480_v55, %v352_v61 }
 0x285   :  { %v1061_v11 = vmul.f32 0.125, %v1050_v10 }
 0x286   :  { %v2015_v12 = vpop.f32.mrf.mxu1 }
 0x287   :  { %v1084_v13 = vsel %vm1062_vm2, %v1061_v11, -inf }
 0x288   :  { %1085 = vmax.xlane.f32.xlu1 %v1084_v13  ;;  %v424_v13 = vadd.f32 %v2480_v55, %v357_v2 }
 0x2f5   :  { %v1065_v15 = vpop.xlane.xlu1 %1064 }
 0x2f6   :  { %v1087_v16 = vsub.f32 %v1054_v46, %v1065_v15 }
 0x2f8   :  { %v1095_v18 = vmul.f32 1.442695, %v1087_v16 }
 0x2f9   :  { %v1068_v20 = vpop.xlane.xlu0 %1067 }
 0x2fa   :  { %2085 = vpow2.f32 %v1095_v18  ;;  %v1088_v22 = vsub.f32 %v1055_v50, %v1068_v20 }
 0x2fc   :  { %v1097_v23 = vmul.f32 1.442695, %v1088_v22 }
 0x2fd   :  { %v1071_v24 = vpop.xlane.xlu0 %1070 }
 0x2fe   :  { %2087 = vpow2.f32 %v1097_v23  ;;  %v1089_v25 = vsub.f32 %v1056_v54, %v1071_v24 }
 0x300   :  { %v1099_v26 = vmul.f32 1.442695, %v1089_v25 }
 0x301   :  { %v1074_v27 = vpop.xlane.xlu1 %1073 }
 0x302   :  { %2089 = vpow2.f32 %v1099_v26  ;;  %v1090_v28 = vsub.f32 %v1057_v58, %v1074_v27  ;;  %v426_v26 = vadd.f32 %v2480_v55, %v2395_v17 }
 0x304   :  { %v1101_v29 = vmul.f32 1.442695, %v1090_v28 }
 0x305   :  { %v1077_v30 = vpop.xlane.xlu0 %1076 }
 0x306   :  { %2091 = vpow2.f32 %v1101_v29  ;;  %v1091_v31 = vsub.f32 %v1058_v62, %v1077_v30  ;;  %v427_v30 = vadd.f32 %v2480_v55, %v2397_v19 }
 0x307   :  { %v2086_v32 = vpop.eup %2085 }
 0x308   :  { %v1103_v33 = vmul.f32 1.442695, %v1091_v31  ;;  %v1111_v34 = vsel %vm1062_vm2, %v2086_v32, 0.0 }
 0x309   :  { %v1080_v35 = vpop.xlane.xlu1 %1079  ;;  %1112 = vadd.xlane.f32.xlu0 %v1111_v34  ;;  %v429_v34 = vadd.f32 %v2480_v55, %v2455_v44 }
 0x30a   :  { %2093 = vpow2.f32 %v1103_v33  ;;  %v1092_v36 = vsub.f32 %v1059_v3, %v1080_v35  ;;  %v361_v3 = vpop.f32.mrf.mxu0 }
 0x30b   :  { %v2088_v37 = vpop.eup %2087 }
 0x30c   :  { %v1105_v38 = vmul.f32 1.442695, %v1092_v36  ;;  %v1114_v39 = vsel %vm1062_vm2, %v2088_v37, 0.0  ;;  %v362_v15 = vpop.f32.mrf.mxu0 }
 0x30d   :  { %1115 = vadd.xlane.f32.xlu1 %v1114_v39  ;;  %v1083_v40 = vpop.xlane.xlu0 %1082  ;;  %v425_v20 = vadd.f32 %v2480_v55, %v362_v15 }
 0x30e   :  { %2095 = vpow2.f32 %v1105_v38  ;;  %v1093_v41 = vsub.f32 %v1060_v7, %v1083_v40 }
 0x30f   :  { %v2090_v42 = vpop.eup %2089 }
 0x310   :  { %v1107_v43 = vmul.f32 1.442695, %v1093_v41  ;;  %v1117_v45 = vsel %vm1062_vm2, %v2090_v42, 0.0 }
 0x311   :  { %v1086_v46 = vpop.xlane.xlu1 %1085  ;;  %1118 = vadd.xlane.f32.xlu0 %v1117_v45 }
 0x312   :  { %2097 = vpow2.f32 %v1107_v43  ;;  %v1094_v47 = vsub.f32 %v1061_v11, %v1086_v46 }
 0x313   :  { %v2468_v48 = vpop.eup %2091 }
 0x314   :  { %v1109_v49 = vmul.f32 1.442695, %v1094_v47  ;;  %v1120_v50 = vsel %vm1062_vm2, %v2468_v48, 0.0 }
 0x315   :  { %1121 = vadd.xlane.f32.xlu1 %v1120_v50 }
 0x316   :  { %2099 = vpow2.f32 %v1109_v49 }
 0x317   :  { %v2472_v51 = vpop.eup %2093 }
 0x318   :  { %v1123_v52 = vsel %vm1062_vm2, %v2472_v51, 0.0 }
 0x319   :  { %1124 = vadd.xlane.f32.xlu0 %v1123_v52 }
 0x31b   :  { %v2476_v53 = vpop.eup %2095 }
 0x31c   :  { %v1126_v54 = vsel %vm1062_vm2, %v2476_v53, 0.0 }
 0x31d   :  { %1127 = vadd.xlane.f32.xlu1 %v1126_v54 }
 0x31f   :  { %v2483_v58 = vpop.eup %2097 }
 0x320   :  { %v1129_v60 = vsel %vm1062_vm2, %v2483_v58, 0.0 }
 0x321   :  { %1130 = vadd.xlane.f32.xlu0 %v1129_v60 }
 0x323   :  { %v2488_v62 = vpop.eup %2099 }
 0x324   :  { %v1132_v1 = vsel %vm1062_vm2, %v2488_v62, 0.0 }
 0x325   :  { %1133 = vadd.xlane.f32.xlu1 %v1132_v1 }
 0x392   :  { %v1113_v4 = vpop.xlane.xlu0 %1112 }
 0x393   :  { %2101 = vrcp.f32 %v1113_v4 }
 0x396   :  { %v1116_v5 = vpop.xlane.xlu1 %1115 }
 0x397   :  { %2103 = vrcp.f32 %v1116_v5 }
 0x39a   :  { %v1119_v6 = vpop.xlane.xlu0 %1118 }
 0x39b   :  { %2105 = vrcp.f32 %v1119_v6 }
 0x39e   :  { %v1122_v7 = vpop.xlane.xlu1 %1121 }
 0x39f   :  { %2107 = vrcp.f32 %v1122_v7 }
 0x3a0   :  { %v2102_v8 = vpop.eup %2101 }
 0x3a1   :  { %v1143_v10 = vmul.f32 %v2102_v8, %v2086_v32  ;;  %v428_v32 = vadd.f32 %v2480_v55, %v2399_v21 }
 0x3a2   :  { %v1125_v11 = vpop.xlane.xlu0 %1124 }
 0x3a3   :  { %2109 = vrcp.f32 %v1125_v11  ;;  %2019 = vmatmul.mubr.msk.f32.vlgmr.msra.gmra.mxu1 %vm1062_vm2, %v1143_v10 }
 0x3a4   :  { %v2104_v12 = vpop.eup %2103  ;;  %2022 = vmatpush3.msra.mxu1 %v423_v9  ;;  %2023 = vmatprep.mubr.msk.f32.mxu1 %vm2272_vm1, %v2270_v0 }
 0x3a5   :  { %v1144_v14 = vmul.f32 %v2104_v12, %v2088_v37  ;;  %2026 = vmatprep.subr.mxu1 %v2270_v0 }
 0x3a6   :  { %v1128_v16 = vpop.xlane.xlu1 %1127 }
 0x3a7   :  { %2111 = vrcp.f32 %v1128_v16  ;;  %2024 = vmatmul.mubr.msk.f32.vlgmr.msra.gmra.mxu1 %vm1062_vm2, %v1144_v14 }
 0x3a8   :  { %v2106_v18 = vpop.eup %2105  ;;  %2027 = vmatpush3.msra.mxu1 %v424_v13  ;;  %2028 = vmatprep.mubr.msk.f32.mxu1 %vm2272_vm1, %v2270_v0 }
 0x3a9   :  { %v1145_v22 = vmul.f32 %v2106_v18, %v2090_v42  ;;  %2031 = vmatprep.subr.mxu1 %v2270_v0 }
 0x3aa   :  { %v1131_v23 = vpop.xlane.xlu0 %1130 }
 0x3ab   :  { %2113 = vrcp.f32 %v1131_v23  ;;  %2029 = vmatmul.mubr.msk.f32.vlgmr.msra.gmra.mxu1 %vm1062_vm2, %v1145_v22 }
 0x3ac   :  { %v2108_v24 = vpop.eup %2107  ;;  %2032 = vmatpush3.msra.mxu1 %v425_v20  ;;  %2033 = vmatprep.mubr.msk.f32.mxu1 %vm2272_vm1, %v2270_v0 }
 0x3ad   :  { %2036 = vmatprep.subr.mxu1 %v2270_v0  ;;  %v1146_v25 = vmul.f32 %v2108_v24, %v2468_v48 }
 0x3ae   :  { %v1134_v27 = vpop.xlane.xlu1 %1133 }
 0x3af   :  { %2115 = vrcp.f32 %v1134_v27  ;;  %2034 = vmatmul.mubr.msk.f32.vlgmr.msra.gmra.mxu1 %vm1062_vm2, %v1146_v25 }
 0x3b0   :  { %v2110_v28 = vpop.eup %2109  ;;  %2037 = vmatpush3.msra.mxu1 %v426_v26  ;;  %2038 = vmatprep.mubr.msk.f32.mxu1 %vm2272_vm1, %v2270_v0 }
 0x3b1   :  { %2041 = vmatprep.subr.mxu1 %v2270_v0  ;;  %v1147_v29 = vmul.f32 %v2110_v28, %v2472_v51 }
 0x3b3   :  { %2039 = vmatmul.mubr.msk.f32.vlgmr.msra.gmra.mxu1 %vm1062_vm2, %v1147_v29 }
 0x3b4   :  { %v2112_v31 = vpop.eup %2111  ;;  %2042 = vmatpush3.msra.mxu1 %v427_v30  ;;  %2043 = vmatprep.mubr.msk.f32.mxu1 %vm2272_vm1, %v2270_v0 }
 0x3b5   :  { %2046 = vmatprep.subr.mxu1 %v2270_v0  ;;  %v1148_v17 = vmul.f32 %v2112_v31, %v2476_v53 }
 0x3b7   :  { %2044 = vmatmul.mubr.msk.f32.vlgmr.msra.gmra.mxu1 %vm1062_vm2, %v1148_v17 }
 0x3b8   :  { %v2114_v33 = vpop.eup %2113  ;;  %2047 = vmatpush3.msra.mxu1 %v428_v32  ;;  %2048 = vmatprep.mubr.msk.f32.mxu1 %vm2272_vm1, %v2270_v0 }
 0x3b9   :  { %2051 = vmatprep.subr.mxu1 %v2270_v0  ;;  %v1149_v19 = vmul.f32 %v2114_v33, %v2483_v58 }
 0x3bb   :  { %2049 = vmatmul.mubr.msk.f32.vlgmr.msra.gmra.mxu1 %vm1062_vm2, %v1149_v19 }
 0x3bc   :  { %v2116_v35 = vpop.eup %2115  ;;  %2052 = vmatpush3.msra.mxu1 %v429_v34  ;;  %2053 = vmatprep.mubr.msk.f32.mxu1 %vm2272_vm1, %v2270_v0 }
 0x3bd   :  { %v1150_v21 = vmul.f32 %v2116_v35, %v2488_v62 }
 0x3bf   :  { %2054 = vmatmul.mubr.msk.f32.vlgmr.msra.gmra.mxu1 %vm1062_vm2, %v1150_v21 }
 0x463   :  { %v1220_v36 = vpop.f32.mrf.mxu1 }
 0x464   :  { %v1735_v37 = vsel %vm127_vm0, %v1220_v36, 0.0 }
 0x465   :  { %1736 = vadd.xlane.f32.xlu0 %v1735_v37  ;;  %v2020_v38 = vpop.f32.mrf.mxu1 }
 0x467   :  { %v1293_v39 = vpop.f32.mrf.mxu1 }
 0x468   :  { %v1738_v40 = vsel %vm127_vm0, %v1293_v39, 0.0 }
 0x469   :  { %1739 = vadd.xlane.f32.xlu1 %v1738_v40  ;;  %v2025_v44 = vpop.f32.mrf.mxu1 }
 0x46b   :  { %v1366_v41 = vpop.f32.mrf.mxu1 }
 0x46c   :  { %v1741_v42 = vsel %vm127_vm0, %v1366_v41, 0.0 }
 0x46d   :  { %1742 = vadd.xlane.f32.xlu0 %v1741_v42  ;;  %v2030_v43 = vpop.f32.mrf.mxu1 }
 0x46f   :  { %v1439_v0 = vpop.f32.mrf.mxu1 }
 0x470   :  { %v1744_v45 = vsel %vm127_vm0, %v1439_v0, 0.0 }
 0x471   :  { %1745 = vadd.xlane.f32.xlu1 %v1744_v45  ;;  %v2035_v46 = vpop.f32.mrf.mxu1 }
 0x473   :  { %v1512_v47 = vpop.f32.mrf.mxu1 }
 0x474   :  { %v1747_v48 = vsel %vm127_vm0, %v1512_v47, 0.0 }
 0x475   :  { %1748 = vadd.xlane.f32.xlu0 %v1747_v48  ;;  %v2040_v49 = vpop.f32.mrf.mxu1 }
 0x477   :  { %v1585_v50 = vpop.f32.mrf.mxu1 }
 0x478   :  { %v1750_v51 = vsel %vm127_vm0, %v1585_v50, 0.0 }
 0x479   :  { %1751 = vadd.xlane.f32.xlu1 %v1750_v51  ;;  %v2045_v52 = vpop.f32.mrf.mxu1 }
 0x47b   :  { %v1658_v53 = vpop.f32.mrf.mxu1 }
 0x47c   :  { %v1753_v54 = vsel %vm127_vm0, %v1658_v53, 0.0 }
 0x47d   :  { %1754 = vadd.xlane.f32.xlu0 %v1753_v54  ;;  %v2050_v55 = vpop.f32.mrf.mxu1 }
 0x47f   :  { %v1731_v56 = vpop.f32.mrf.mxu1 }
 0x480   :  { %v1756_v57 = vsel %vm127_vm0, %v1731_v56, 0.0 }
 0x481   :  { %1757 = vadd.xlane.f32.xlu1 %v1756_v57  ;;  %v2055_v58 = vpop.f32.mrf.mxu1 }
 0x4ee   :  { %v1737_v59 = vpop.xlane.xlu0 %1736 }
 0x4ef   :  { %v1760_v60 = vmul.f32 0.015625, %v1737_v59 }
 0x4f1   :  { %v2544_v61 = vsub.f32 %v1220_v36, %v1760_v60 }
 0x4f2   :  { %v1740_v62 = vpop.xlane.xlu1 %1739 }
 0x4f3   :  { %v1761_v63 = vmul.f32 0.015625, %v1740_v62  ;;  %v1776_v1 = vmul.f32 %v2544_v61, %v2544_v61 }
 0x4f5   :  { %v2548_v2 = vsub.f32 %v1293_v39, %v1761_v63  ;;  %v1784_v3 = vsel %vm127_vm0, %v1776_v1, 0.0 }
 0x4f6   :  { %v1743_v4 = vpop.xlane.xlu0 %1742  ;;  %1785 = vadd.xlane.f32.xlu0 %v1784_v3 }
 0x4f7   :  { %v1762_v5 = vmul.f32 0.015625, %v1743_v4  ;;  %v1777_v6 = vmul.f32 %v2548_v2, %v2548_v2 }
 0x4f9   :  { %v2553_v7 = vsub.f32 %v1366_v41, %v1762_v5  ;;  %v1787_v8 = vsel %vm127_vm0, %v1777_v6, 0.0 }
 0x4fa   :  { %v1746_v9 = vpop.xlane.xlu1 %1745  ;;  %1788 = vadd.xlane.f32.xlu1 %v1787_v8 }
 0x4fb   :  { %v1763_v10 = vmul.f32 0.015625, %v1746_v9  ;;  %v1778_v11 = vmul.f32 %v2553_v7, %v2553_v7 }
 0x4fd   :  { %v2558_v12 = vsub.f32 %v1439_v0, %v1763_v10  ;;  %v1790_v13 = vsel %vm127_vm0, %v1778_v11, 0.0 }
 0x4fe   :  { %v1749_v14 = vpop.xlane.xlu0 %1748  ;;  %1791 = vadd.xlane.f32.xlu0 %v1790_v13 }
 0x4ff   :  { %v1764_v15 = vmul.f32 0.015625, %v1749_v14  ;;  %v1779_v16 = vmul.f32 %v2558_v12, %v2558_v12 }
 0x501   :  { %v2563_v18 = vsub.f32 %v1512_v47, %v1764_v15  ;;  %v1793_v20 = vsel %vm127_vm0, %v1779_v16, 0.0 }
 0x502   :  { %v1752_v22 = vpop.xlane.xlu1 %1751  ;;  %1794 = vadd.xlane.f32.xlu1 %v1793_v20 }
 0x503   :  { %v1765_v23 = vmul.f32 0.015625, %v1752_v22  ;;  %v1780_v24 = vmul.f32 %v2563_v18, %v2563_v18 }
 0x505   :  { %v2568_v25 = vsub.f32 %v1585_v50, %v1765_v23  ;;  %v1796_v26 = vsel %vm127_vm0, %v1780_v24, 0.0  ;;  %v1942_v50 = vld [vmem:[#allocation10 + $0x3] ss:$0 sm:$0xff] }
 0x506   :  { %1797 = vadd.xlane.f32.xlu0 %v1796_v26  ;;  %v1755_v27 = vpop.xlane.xlu0 %1754 }
 0x507   :  { %v1766_v28 = vmul.f32 0.015625, %v1755_v27  ;;  %v1781_v29 = vmul.f32 %v2568_v25, %v2568_v25 }
 0x509   :  { %v2573_v30 = vsub.f32 %v1658_v53, %v1766_v28  ;;  %v1799_v31 = vsel %vm127_vm0, %v1781_v29, 0.0  ;;  %v1943_v53 = vld [vmem:[#allocation10 + $0x4] ss:$0 sm:$0xff] }
 0x50a   :  { %1800 = vadd.xlane.f32.xlu1 %v1799_v31  ;;  %v1758_v17 = vpop.xlane.xlu1 %1757 }
 0x50b   :  { %v1767_v32 = vmul.f32 0.015625, %v1758_v17  ;;  %v1782_v33 = vmul.f32 %v2573_v30, %v2573_v30 }
 0x50d   :  { %v2578_v19 = vsub.f32 %v1731_v56, %v1767_v32  ;;  %v1802_v34 = vsel %vm127_vm0, %v1782_v33, 0.0 }
 0x50e   :  { %1803 = vadd.xlane.f32.xlu0 %v1802_v34 }
 0x50f   :  { %v1783_v35 = vmul.f32 %v2578_v19, %v2578_v19 }
 0x511   :  { %v1805_v21 = vsel %vm127_vm0, %v1783_v35, 0.0 }
 0x512   :  { %1806 = vadd.xlane.f32.xlu1 %v1805_v21 }
 0x57f   :  { %v1786_v36 = vpop.xlane.xlu0 %1785 }
 0x580   :  { %v1808_v37 = vmul.f32 0.015625, %v1786_v36 }
 0x582   :  { %v1816_v38 = vadd.f32 1e-05, %v1808_v37 }
 0x583   :  { %v1789_v39 = vpop.xlane.xlu1 %1788 }
 0x584   :  { %2117 = vrsqrt.f32 %v1816_v38  ;;  %v1809_v40 = vmul.f32 0.015625, %v1789_v39 }
 0x586   :  { %v1817_v44 = vadd.f32 1e-05, %v1809_v40 }
 0x587   :  { %v1792_v41 = vpop.xlane.xlu0 %1791 }
 0x588   :  { %2119 = vrsqrt.f32 %v1817_v44  ;;  %v1810_v42 = vmul.f32 0.015625, %v1792_v41 }
 0x58a   :  { %v1818_v43 = vadd.f32 1e-05, %v1810_v42 }
 0x58b   :  { %v1795_v0 = vpop.xlane.xlu1 %1794 }
 0x58c   :  { %2121 = vrsqrt.f32 %v1818_v43  ;;  %v1811_v45 = vmul.f32 0.015625, %v1795_v0 }
 0x58e   :  { %v1819_v46 = vadd.f32 1e-05, %v1811_v45 }
 0x58f   :  { %v1798_v47 = vpop.xlane.xlu0 %1797 }
 0x590   :  { %2123 = vrsqrt.f32 %v1819_v46  ;;  %v1812_v48 = vmul.f32 0.015625, %v1798_v47 }
 0x591   :  { %v2118_v49 = vpop.eup %2117 }
 0x592   :  { %v1832_v51 = vmul.f32 %v2118_v49, %v2544_v61  ;;  %v1820_v52 = vadd.f32 1e-05, %v1812_v48 }
 0x593   :  { %v1801_v54 = vpop.xlane.xlu1 %1800 }
 0x594   :  { %v1844_v55 = vmul.f32 %v1942_v50, %v1832_v51  ;;  %2125 = vrsqrt.f32 %v1820_v52  ;;  %v1813_v56 = vmul.f32 0.015625, %v1801_v54 }
 0x595   :  { %v2120_v57 = vpop.eup %2119 }
 0x596   :  { %v1856_v58 = vadd.f32 %v1943_v53, %v1844_v55  ;;  %v1833_v59 = vmul.f32 %v2120_v57, %v2548_v2  ;;  %v1821_v60 = vadd.f32 1e-05, %v1813_v56 }
 0x597   :  { %v1804_v62 = vpop.xlane.xlu0 %1803 }
 0x598   :  { %1864 = vst.msk [vmem:[#allocation11] sm:$0xff] %vm127_vm0, %v1856_v58  ;;  %v1845_v63 = vmul.f32 %v1942_v50, %v1833_v59  ;;  %2127 = vrsqrt.f32 %v1821_v60  ;;  %v1814_v1 = vmul.f32 0.015625, %v1804_v62 }
 0x599   :  { %v2122_v3 = vpop.eup %2121 }
 0x59a   :  { %v1857_v4 = vadd.f32 %v1943_v53, %v1845_v63  ;;  %v1834_v61 = vmul.f32 %v2122_v3, %v2553_v7  ;;  %v1822_v5 = vadd.f32 1e-05, %v1814_v1 }
 0x59b   :  { %v1807_v6 = vpop.xlane.xlu1 %1806 }
 0x59c   :  { %1865 = vst.msk [vmem:[#allocation11 + $0x8] sm:$0xff] %vm127_vm0, %v1857_v4  ;;  %v1846_v8 = vmul.f32 %v1942_v50, %v1834_v61  ;;  %2129 = vrsqrt.f32 %v1822_v5  ;;  %v1815_v9 = vmul.f32 0.015625, %v1807_v6 }
 0x59d   :  { %v2124_v10 = vpop.eup %2123 }
 0x59e   :  { %v1858_v2 = vadd.f32 %v1943_v53, %v1846_v8  ;;  %v1835_v11 = vmul.f32 %v2124_v10, %v2558_v12  ;;  %v1823_v13 = vadd.f32 1e-05, %v1815_v9 }
 0x5a0   :  { %1866 = vst.msk [vmem:[#allocation11 + $0x10] sm:$0xff] %vm127_vm0, %v1858_v2  ;;  %v1847_v14 = vmul.f32 %v1942_v50, %v1835_v11  ;;  %2131 = vrsqrt.f32 %v1823_v13 }
 0x5a1   :  { %v2126_v15 = vpop.eup %2125 }
 0x5a2   :  { %v1859_v16 = vadd.f32 %v1943_v53, %v1847_v14  ;;  %v1836_v7 = vmul.f32 %v2126_v15, %v2563_v18 }
 0x5a4   :  { %1867 = vst.msk [vmem:[#allocation11 + $0x18] sm:$0xff] %vm127_vm0, %v1859_v16  ;;  %v1848_v20 = vmul.f32 %v1942_v50, %v1836_v7 }
 0x5a5   :  { %v2128_v22 = vpop.eup %2127 }
 0x5a6   :  { %v1860_v23 = vadd.f32 %v1943_v53, %v1848_v20  ;;  %v1837_v24 = vmul.f32 %v2128_v22, %v2568_v25 }
 0x5a8   :  { %1868 = vst.msk [vmem:[#allocation11 + $0x20] sm:$0xff] %vm127_vm0, %v1860_v23  ;;  %v1849_v26 = vmul.f32 %v1942_v50, %v1837_v24 }
 0x5a9   :  { %v2130_v12 = vpop.eup %2129 }
 0x5aa   :  { %v1861_v27 = vadd.f32 %v1943_v53, %v1849_v26  ;;  %v1838_v28 = vmul.f32 %v2130_v12, %v2573_v30 }
 0x5ac   :  { %1869 = vst.msk [vmem:[#allocation11 + $0x28] sm:$0xff] %vm127_vm0, %v1861_v27  ;;  %v1850_v29 = vmul.f32 %v1942_v50, %v1838_v28 }
 0x5ad   :  { %v2132_v31 = vpop.eup %2131 }
 0x5ae   :  { %v1862_v17 = vadd.f32 %v1943_v53, %v1850_v29  ;;  %v1839_v18 = vmul.f32 %v2132_v31, %v2578_v19 }
 0x5b0   :  { %1870 = vst.msk [vmem:[#allocation11 + $0x30] sm:$0xff] %vm127_vm0, %v1862_v17  ;;  %v1851_v32 = vmul.f32 %v1942_v50, %v1839_v18 }
 0x5b2   :  { %v1863_v25 = vadd.f32 %v1943_v53, %v1851_v32 }
 0x5b4   :  { %1871 = vst.msk [vmem:[#allocation11 + $0x38] sm:$0xff] %vm127_vm0, %v1863_v25 }
 0x5b5   :  { %2244 = shalt.err (!%p2241_p1)
}
 0x5b6   :  { %1883 = dma.vmem_to_hbm [thread:$0]  %s1878_s19, 1024, %s2611_s5, [#allocation4], %s2263_s23, %s2263_s23, %s2264_s24  }
 0x5b7   :  { %2259 = dma.done.wait [#allocation4], 1024  }
 0x5b8   :  { %2260 = vsyncadd [#allocation4], 4294966272 }
 0x5b9   :  { %1887 = vsyncpa [#allocation3], 1 }
 0x5ba   :  { %1888 = vsyncpa [#allocation6], 1 }
 0x5bb   :  { %1889 = vsyncpa [#allocation9], 1 }
 0x5bc   :  { %1890 = vsyncpa [#allocation4], 1 }

</bundles_post_ra>
